<compile_context>
chip_gen: v7x
topology: tpu7x:2x2x1
jax: 0.10.0
libtpu: 0.0.40
codegen_flags: <defaults>
</compile_context>

<pallas_src>
import jax
import jax.numpy as jnp
from jax.experimental import pallas as pl
from jax.experimental.pallas import tpu as pltpu


def attn_kernel(x_ref, wab_t_ref, bab_t_ref, wc_ref, bc_t_ref, out_ref):
    """One grid step: a block of `bt` bags.

    x_ref:     (bt, N, L)  native PyTorch layout (no wrapper transpose of x)
    wab_t_ref: (2D, L)     fused [Wa; Wb] (transposed), VMEM resident
    bab_t_ref: (2D, 1)     fused [ba; bb] column (broadcasts over lanes)
    wc_ref:    (D, C)
    bc_t_ref:  (C, 1)
    out_ref:   (bt, C, N)  transposed output (instances on the lane axis)
    """
    bt = x_ref.shape[0]
    D = wc_ref.shape[0]
    C = wc_ref.shape[1]

    wab_t = wab_t_ref[...]
    bab_t = bab_t_ref[...].astype(jnp.float32)
    wc = wc_ref[...].astype(jnp.float32)
    bc_t = bc_t_ref[...].astype(jnp.float32)

    # Static (fully unrolled) loop over the bags in this block — amortizes the
    # per-grid-step fixed cost without changing the per-bag math.
    for b in range(bt):
        x_b = x_ref[b]                                         # (N, L)

        # Fused gate projection: contract over L with x in native (N, L)
        # layout (transposed-RHS MXU matmul) -> instance-on-lane result.
        ab_t = jax.lax.dot_general(
            wab_t, x_b, (((1,), (1,)), ((), ())),
            preferred_element_type=jnp.float32,
        ) + bab_t                                              # (2D, N), f32

        a_t = jnp.tanh(ab_t[:D])                               # (D, N)
        # sigmoid(z) = 0.5*(1 + tanh(z/2)): one EUP push instead of exp+recip.
        b_t = 0.5 * (1.0 + jnp.tanh(0.5 * ab_t[D:]))           # (D, N)
        h_t = a_t * b_t                                        # (D, N)

        # Final D->C projection.  C (= n_classes) is tiny: VPU multiply +
        # cross-sublane (XLU) reduce instead of a K=D MXU matmul.
        if C == 1:
            logits_t = jnp.sum(h_t * wc, axis=0, keepdims=True) + bc_t        # (1, N)
        elif C <= 8:
            cols = [jnp.sum(h_t * wc[:, c:c + 1], axis=0, keepdims=True)
                    for c in range(C)]
            logits_t = jnp.concatenate(cols, axis=0) + bc_t                   # (C, N)
        else:
            logits_t = jax.lax.dot_general(
                wc, h_t, (((0,), (0,)), ((), ())),
                preferred_element_type=jnp.float32) + bc_t                    # (C, N)

        # Softmax over the instance axis N (== PyTorch softmax(dim=1)),
        # computed along the lane axis; divide replaced by EUP reciprocal.
        m = jnp.max(logits_t, axis=-1, keepdims=True)          # (C, 1)
        e = jnp.exp(logits_t - m)                              # (C, N)
        s = jnp.sum(e, axis=-1, keepdims=True)                 # (C, 1)
        attn = e * pl.reciprocal(s, approx=True)               # (C, N)
        out_ref[b] = attn.astype(out_ref.dtype)


def _pick_batch_tile(B, N, L, D, C, budget_bytes=8 * 1024 * 1024):
    """Bags per grid step: as many as fit a modest VMEM budget (amortizes the
    ~0.35us per-step overhead) while keeping >=2 grid steps for v7x's two
    TensorCores once B is large enough for that to matter."""
    itemsize = 4

    def step_bytes(bt):
        x_block = 2 * bt * N * L * itemsize            # double-buffered x block
        inter = (6 * D + 4 * C) * N * itemsize         # f32 per-bag temporaries
        return x_block + inter

    bt = 1
    for cand in range(1, B + 1):                       # largest divisor that fits
        if B % cand == 0 and step_bytes(cand) <= budget_bytes:
            bt = cand
    if B > 2 and B // bt < 2:                          # keep 2 blocks for v7x
        for cand in range(bt - 1, 0, -1):
            if B % cand == 0 and B // cand >= 2:
                bt = cand
                break
    return bt


@jax.jit
def attn_net_pallas(x, wa, ba, wb, bb, wc, bc):
    """x: [B, N, L]; wa/wb: [L, D]; ba/bb: [1, D]; wc: [D, C]; bc: [1, C].
    Returns the softmax attention map [B, N, C] (== AttnNet.forward)."""
    B, N, L = x.shape
    D = wa.shape[1]
    C = wc.shape[1]

    # Weight fusion (tiny; fused under jit, not a per-call HBM pass over x).
    # MXU operands follow x.dtype: feed bf16 x from the producer on v5e/v6e/v7x
    # to halve HBM traffic; accumulation / elementwise / softmax stay f32.
    wab_t = jnp.concatenate([wa.T, wb.T], axis=0).astype(x.dtype)     # (2D, L)
    bab_t = jnp.concatenate([ba, bb], axis=1).T.astype(jnp.float32)   # (2D, 1)
    wc_f = wc.astype(jnp.float32)                                     # (D, C)
    bc_t = bc.T.astype(jnp.float32)                                   # (C, 1)

    bt = _pick_batch_tile(B, N, L, D, C)

    def full_spec(shape):
        nd = len(shape)
        return pl.BlockSpec(shape, lambda i, nd=nd: (0,) * nd)

    out_t = pl.pallas_call(
        attn_kernel,
        out_shape=jax.ShapeDtypeStruct((B, C, N), jnp.float32),
        grid_spec=pl.GridSpec(
            grid=(B // bt,),
            in_specs=[
                pl.BlockSpec((bt, N, L), lambda i: (i, 0, 0)),  # x, native layout
                full_spec((2 * D, L)),   # fused Wa|Wb (transposed), VMEM resident
                full_spec((2 * D, 1)),   # fused ba|bb
                full_spec((D, C)),       # Wc
                full_spec((C, 1)),       # bc
            ],
            out_specs=pl.BlockSpec((bt, C, N), lambda i: (i, 0, 0)),
        ),
        compiler_params=pltpu.CompilerParams(
            dimension_semantics=("parallel",),
            vmem_limit_bytes=32 * 1024 * 1024,
        ),
    )(x, wab_t, bab_t, wc_f, bc_t)

    # (B, C, N) -> PyTorch layout (B, N, C).  With C = n_classes tiny this is
    # negligible data (unlike transposing x, which is now avoided entirely).
    return jnp.transpose(out_t, (0, 2, 1))


def attn_net_ref(x, wa, ba, wb, bb, wc, bc):
    a = jnp.tanh(x @ wa + ba)
    b = jax.nn.sigmoid(x @ wb + bb)
    logits = (a * b) @ wc + bc
    return jax.nn.softmax(logits, axis=1)


if __name__ == "__main__":
    # Small shapes consistent with the module (Linear(L, D), Linear(D, C)).
    B, N, L, D, C = 2, 8, 32, 16, 1

    key = jax.random.PRNGKey(0)
    kx, kwa, kba, kwb, kbb, kwc, kbc = jax.random.split(key, 7)

    x = jax.random.normal(kx, (B, N, L), dtype=jnp.float32)

    # Deterministic parameter init (uniform, roughly matching nn.Linear scale).
    def lin_init(kw, kb, fan_in, fan_out):
        bound = 1.0 / (fan_in ** 0.5)
        w = jax.random.uniform(kw, (fan_in, fan_out), jnp.float32, -bound, bound)
        b = jax.random.uniform(kb, (1, fan_out), jnp.float32, -bound, bound)
        return w, b

    wa, ba = lin_init(kwa, kba, L, D)   # attention_a: Linear(L, D) + Tanh
    wb, bb = lin_init(kwb, kbb, L, D)   # attention_b: Linear(L, D) + Sigmoid
    wc, bc = lin_init(kwc, kbc, D, C)   # attention_c: Linear(D, C)

    out = attn_net_pallas(x, wa, ba, wb, bb, wc, bc)
    out = jax.block_until_ready(out)

    with jax.default_matmul_precision("highest"):
        ref = attn_net_ref(x, wa, ba, wb, bb, wc, bc)

    assert out.shape == (B, N, C)
    # Tolerance covers MXU bf16-pass matmuls and the approximate (EUP)
    # reciprocal used for the softmax normalization.
    max_err = float(jnp.max(jnp.abs(out - ref)))
    assert jnp.allclose(out, ref, atol=1e-3, rtol=1e-3), max_err
    # Softmax over the instance axis must sum to ~1 per (bag, class).
    assert jnp.allclose(out.sum(axis=1), 1.0, atol=2e-3)

    print("KERNEL_OK")
</pallas_src>

<mosaic_0001>
module attributes {stable_mosaic.version = 11 : i64} {
  func.func @attn_kernel(%arg0: i32, %arg1: memref<2x8x32xf32, #tpu.memory_space<vmem>>, %arg2: memref<32x32xf32, #tpu.memory_space<vmem>>, %arg3: memref<32x1xf32, #tpu.memory_space<vmem>>, %arg4: memref<16x1xf32, #tpu.memory_space<vmem>>, %arg5: memref<1x1xf32, #tpu.memory_space<vmem>>, %arg6: memref<2x1x8xf32, #tpu.memory_space<vmem>>) attributes {dimension_semantics = [#tpu.dimension_semantics<parallel>], iteration_bounds = array<i64: 1>, scalar_prefetch = 0 : i64, scratch_operands = 0 : i64, tpu.core_type = #tpu.core_type<tc>, window_params = [{transform_indices = @transform_0, window_bounds = array<i64: 2, 8, 32>}, {pipeline_mode = #tpu.pipeline_mode<synchronous>, transform_indices = @transform_1, window_bounds = array<i64: 32, 32>}, {pipeline_mode = #tpu.pipeline_mode<synchronous>, transform_indices = @transform_2, window_bounds = array<i64: 32, 1>}, {pipeline_mode = #tpu.pipeline_mode<synchronous>, transform_indices = @transform_3, window_bounds = array<i64: 16, 1>}, {pipeline_mode = #tpu.pipeline_mode<synchronous>, transform_indices = @transform_4, window_bounds = array<i64: 1, 1>}, {transform_indices = @transform_5, window_bounds = array<i64: 2, 1, 8>}]} {
    %c0 = arith.constant 0 : index
    %c0_0 = arith.constant 0 : index
    %0 = vector.load %arg2[%c0, %c0_0] : memref<32x32xf32, #tpu.memory_space<vmem>>, vector<32x32xf32>
    %c0_1 = arith.constant 0 : index
    %c0_2 = arith.constant 0 : index
    %1 = vector.load %arg3[%c0_1, %c0_2] : memref<32x1xf32, #tpu.memory_space<vmem>>, vector<32x1xf32>
    %c0_3 = arith.constant 0 : index
    %c0_4 = arith.constant 0 : index
    %2 = vector.load %arg4[%c0_3, %c0_4] : memref<16x1xf32, #tpu.memory_space<vmem>>, vector<16x1xf32>
    %c0_5 = arith.constant 0 : index
    %c0_6 = arith.constant 0 : index
    %3 = vector.load %arg5[%c0_5, %c0_6] : memref<1x1xf32, #tpu.memory_space<vmem>>, vector<1x1xf32>
    %c0_7 = arith.constant 0 : index
    %c0_8 = arith.constant 0 : index
    %c0_9 = arith.constant 0 : index
    %4 = vector.load %arg1[%c0_7, %c0_8, %c0_9] : memref<2x8x32xf32, #tpu.memory_space<vmem>>, vector<1x8x32xf32>
    %5 = vector.shape_cast %4 : vector<1x8x32xf32> to vector<8x32xf32>
    %cst = arith.constant dense<0.000000e+00> : vector<32x8xf32>
    %6 = tpu.matmul %0, %5, %cst {dimension_numbers = #tpu.dot_dimension_numbers<[1], [1], [0], [0], [0, 0, 1, 0], [], []>} : vector<32x32xf32>, vector<8x32xf32>, vector<32x8xf32> -> vector<32x8xf32>
    %7 = vector.broadcast %1 : vector<32x1xf32> to vector<32x8xf32>
    %8 = arith.addf %6, %7 : vector<32x8xf32>
    %9 = vector.extract_strided_slice %8 {offsets = [0, 0], sizes = [16, 8], strides = [1, 1]} : vector<32x8xf32> to vector<16x8xf32>
    %10 = math.tanh %9 : vector<16x8xf32>
    %11 = vector.extract_strided_slice %8 {offsets = [16, 0], sizes = [16, 8], strides = [1, 1]} : vector<32x8xf32> to vector<16x8xf32>
    %cst_10 = arith.constant 5.000000e-01 : f32
    %12 = vector.broadcast %cst_10 : f32 to vector<16x8xf32>
    %13 = arith.mulf %12, %11 : vector<16x8xf32>
    %14 = math.tanh %13 : vector<16x8xf32>
    %cst_11 = arith.constant 1.000000e+00 : f32
    %15 = vector.broadcast %cst_11 : f32 to vector<16x8xf32>
    %16 = arith.addf %15, %14 : vector<16x8xf32>
    %cst_12 = arith.constant 5.000000e-01 : f32
    %17 = vector.broadcast %cst_12 : f32 to vector<16x8xf32>
    %18 = arith.mulf %17, %16 : vector<16x8xf32>
    %19 = arith.mulf %10, %18 : vector<16x8xf32>
    %20 = vector.broadcast %2 : vector<16x1xf32> to vector<16x8xf32>
    %21 = arith.mulf %19, %20 : vector<16x8xf32>
    %cst_13 = arith.constant dense<0.000000e+00> : vector<8xf32>
    %22 = vector.multi_reduction <add>, %21, %cst_13 [0] : vector<16x8xf32> to vector<8xf32>
    %23 = vector.shape_cast %22 : vector<8xf32> to vector<1x8xf32>
    %24 = vector.broadcast %3 : vector<1x1xf32> to vector<1x8xf32>
    %25 = arith.addf %23, %24 : vector<1x8xf32>
    %cst_14 = arith.constant dense<0xFF800000> : vector<1xf32>
    %26 = vector.multi_reduction <maximumf>, %25, %cst_14 [1] : vector<1x8xf32> to vector<1xf32>
    %27 = vector.shape_cast %26 : vector<1xf32> to vector<1x1xf32>
    %28 = vector.broadcast %27 : vector<1x1xf32> to vector<1x8xf32>
    %29 = arith.subf %25, %28 : vector<1x8xf32>
    %30 = math.exp %29 : vector<1x8xf32>
    %cst_15 = arith.constant dense<0.000000e+00> : vector<1xf32>
    %31 = vector.multi_reduction <add>, %30, %cst_15 [1] : vector<1x8xf32> to vector<1xf32>
    %32 = vector.shape_cast %31 : vector<1xf32> to vector<1x1xf32>
    %33 = tpu.reciprocal %32 {approx = true} : vector<1x1xf32> -> vector<1x1xf32>
    %34 = vector.broadcast %33 : vector<1x1xf32> to vector<1x8xf32>
    %35 = arith.mulf %30, %34 : vector<1x8xf32>
    %c0_16 = arith.constant 0 : index
    %c0_17 = arith.constant 0 : index
    %c0_18 = arith.constant 0 : index
    %36 = vector.load %arg6[%c0_16, %c0_17, %c0_18] : memref<2x1x8xf32, #tpu.memory_space<vmem>>, vector<1x1x8xf32>
    %37 = vector.shape_cast %36 : vector<1x1x8xf32> to vector<1x8xf32>
    %38 = vector.shape_cast %35 : vector<1x8xf32> to vector<1x1x8xf32>
    tpu.vector_store %arg6[%c0_16, %c0_17, %c0_18], %38 {strides = array<i32>} : memref<2x1x8xf32, #tpu.memory_space<vmem>>, vector<1x1x8xf32>,
    %c1 = arith.constant 1 : index
    %c0_19 = arith.constant 0 : index
    %c0_20 = arith.constant 0 : index
    %39 = vector.load %arg1[%c1, %c0_19, %c0_20] : memref<2x8x32xf32, #tpu.memory_space<vmem>>, vector<1x8x32xf32>
    %40 = vector.shape_cast %39 : vector<1x8x32xf32> to vector<8x32xf32>
    %cst_21 = arith.constant dense<0.000000e+00> : vector<32x8xf32>
    %41 = tpu.matmul %0, %40, %cst_21 {dimension_numbers = #tpu.dot_dimension_numbers<[1], [1], [0], [0], [0, 0, 1, 0], [], []>} : vector<32x32xf32>, vector<8x32xf32>, vector<32x8xf32> -> vector<32x8xf32>
    %42 = vector.broadcast %1 : vector<32x1xf32> to vector<32x8xf32>
    %43 = arith.addf %41, %42 : vector<32x8xf32>
    %44 = vector.extract_strided_slice %43 {offsets = [0, 0], sizes = [16, 8], strides = [1, 1]} : vector<32x8xf32> to vector<16x8xf32>
    %45 = math.tanh %44 : vector<16x8xf32>
    %46 = vector.extract_strided_slice %43 {offsets = [16, 0], sizes = [16, 8], strides = [1, 1]} : vector<32x8xf32> to vector<16x8xf32>
    %cst_22 = arith.constant 5.000000e-01 : f32
    %47 = vector.broadcast %cst_22 : f32 to vector<16x8xf32>
    %48 = arith.mulf %47, %46 : vector<16x8xf32>
    %49 = math.tanh %48 : vector<16x8xf32>
    %cst_23 = arith.constant 1.000000e+00 : f32
    %50 = vector.broadcast %cst_23 : f32 to vector<16x8xf32>
    %51 = arith.addf %50, %49 : vector<16x8xf32>
    %cst_24 = arith.constant 5.000000e-01 : f32
    %52 = vector.broadcast %cst_24 : f32 to vector<16x8xf32>
    %53 = arith.mulf %52, %51 : vector<16x8xf32>
    %54 = arith.mulf %45, %53 : vector<16x8xf32>
    %55 = vector.broadcast %2 : vector<16x1xf32> to vector<16x8xf32>
    %56 = arith.mulf %54, %55 : vector<16x8xf32>
    %cst_25 = arith.constant dense<0.000000e+00> : vector<8xf32>
    %57 = vector.multi_reduction <add>, %56, %cst_25 [0] : vector<16x8xf32> to vector<8xf32>
    %58 = vector.shape_cast %57 : vector<8xf32> to vector<1x8xf32>
    %59 = vector.broadcast %3 : vector<1x1xf32> to vector<1x8xf32>
    %60 = arith.addf %58, %59 : vector<1x8xf32>
    %cst_26 = arith.constant dense<0xFF800000> : vector<1xf32>
    %61 = vector.multi_reduction <maximumf>, %60, %cst_26 [1] : vector<1x8xf32> to vector<1xf32>
    %62 = vector.shape_cast %61 : vector<1xf32> to vector<1x1xf32>
    %63 = vector.broadcast %62 : vector<1x1xf32> to vector<1x8xf32>
    %64 = arith.subf %60, %63 : vector<1x8xf32>
    %65 = math.exp %64 : vector<1x8xf32>
    %cst_27 = arith.constant dense<0.000000e+00> : vector<1xf32>
    %66 = vector.multi_reduction <add>, %65, %cst_27 [1] : vector<1x8xf32> to vector<1xf32>
    %67 = vector.shape_cast %66 : vector<1xf32> to vector<1x1xf32>
    %68 = tpu.reciprocal %67 {approx = true} : vector<1x1xf32> -> vector<1x1xf32>
    %69 = vector.broadcast %68 : vector<1x1xf32> to vector<1x8xf32>
    %70 = arith.mulf %65, %69 : vector<1x8xf32>
    %c1_28 = arith.constant 1 : index
    %c0_29 = arith.constant 0 : index
    %c0_30 = arith.constant 0 : index
    %71 = vector.load %arg6[%c1_28, %c0_29, %c0_30] : memref<2x1x8xf32, #tpu.memory_space<vmem>>, vector<1x1x8xf32>
    %72 = vector.shape_cast %71 : vector<1x1x8xf32> to vector<1x8xf32>
    %73 = vector.shape_cast %70 : vector<1x8xf32> to vector<1x1x8xf32>
    tpu.vector_store %arg6[%c1_28, %c0_29, %c0_30], %73 {strides = array<i32>} : memref<2x1x8xf32, #tpu.memory_space<vmem>>, vector<1x1x8xf32>,
    return
  }
  func.func @transform_0(%arg0: i32) -> (i32, i32, i32) {
    %c0_i32 = arith.constant 0 : i32
    %c0_i32_0 = arith.constant 0 : i32
    %c0_i32_1 = arith.constant 0 : i32
    return %arg0, %c0_i32, %c0_i32_0 : i32, i32, i32
  }
  func.func @transform_1(%arg0: i32) -> (i32, i32) {
    %c0_i32 = arith.constant 0 : i32
    %c0_i32_0 = arith.constant 0 : i32
    %c0_i32_1 = arith.constant 0 : i32
    return %c0_i32, %c0_i32_0 : i32, i32
  }
  func.func @transform_2(%arg0: i32) -> (i32, i32) {
    %c0_i32 = arith.constant 0 : i32
    %c0_i32_0 = arith.constant 0 : i32
    %c0_i32_1 = arith.constant 0 : i32
    return %c0_i32, %c0_i32_0 : i32, i32
  }
  func.func @transform_3(%arg0: i32) -> (i32, i32) {
    %c0_i32 = arith.constant 0 : i32
    %c0_i32_0 = arith.constant 0 : i32
    %c0_i32_1 = arith.constant 0 : i32
    return %c0_i32, %c0_i32_0 : i32, i32
  }
  func.func @transform_4(%arg0: i32) -> (i32, i32) {
    %c0_i32 = arith.constant 0 : i32
    %c0_i32_0 = arith.constant 0 : i32
    %c0_i32_1 = arith.constant 0 : i32
    return %c0_i32, %c0_i32_0 : i32, i32
  }
  func.func @transform_5(%arg0: i32) -> (i32, i32, i32) {
    %c0_i32 = arith.constant 0 : i32
    %c0_i32_0 = arith.constant 0 : i32
    %c0_i32_1 = arith.constant 0 : i32
    return %arg0, %c0_i32, %c0_i32_0 : i32, i32, i32
  }
}

</mosaic_0001>

<bundles_post_ra>
// kernel: attn_net_pallas.1
= control target key start
LH: loop header
LB: loop body
LE: loop exit
PB: predicated region body
PF: predicated region fallthrough
CT: control target
= control target key end

     0   :  { %s552_s0 = inlined_call_operand.vmem [shape: f32[2,8,32], index: 0, kind: input, shape index: {}]   ;;  %s553_s1 = inlined_call_operand.vmem [shape: f32[32,32], index: 1, kind: input, shape index: {}]   ;;  %s554_s2 = inlined_call_operand.vmem [shape: f32[32,1], index: 2, kind: input, shape index: {}]   ;;  %s555_s3 = inlined_call_operand.vmem [shape: f32[16,1], index: 3, kind: input, shape index: {}]   ;;  %s556_s4 = inlined_call_operand.<no memory space> [shape: f32[1,1], index: 4, kind: input, shape index: {}]   ;;  %s557_s5 = inlined_call_operand.hbm [shape: f32[2,1,8], index: 5, kind: output, shape index: {}]  }
   0x1   :  { %v10_v0 = vstv %s556_s4 }
   0x2   :  { %11 = vst [vmem:[#allocation2] sm:$0x1] %v10_v0 }
   0x3   :  { %v34_v1 = vld [vmem:[%s552_s0] sm:$0xff]  ;;  %vm55_vm0 = vcmask 261120   ;;  %v361_v2 = vld [vmem:[%s552_s0 + $0x8] sm:$0xff]  ;;  %v25_v5 = vld [vmem:[%s553_s1 + $0x10] sm:$0xff]  ;;  %v447_v6 = vmov 0  }
   0x4   :  { %v23_v3 = vld [vmem:[%s553_s1] sm:$0xff]  ;;  %377 = vmatprep.subr.msk.mxu0 %vm55_vm0, %v34_v1  ;;  %385 = vmatprep.subr.msk.mxu1 %vm55_vm0, %v361_v2  ;;  %v24_v4 = vld [vmem:[%s553_s1 + $0x8] sm:$0xff]  ;;  %v29_v7 = vld [vmem:[%s554_s2 + $0x10] sm:$0xff] }
   0x5   :  { %378 = vmatpush3.xpose.msk.msra.mxu0 %vm55_vm0, %v34_v1  ;;  %386 = vmatpush3.xpose.msk.msra.mxu1 %vm55_vm0, %v361_v2  ;;  %v27_v8 = vld [vmem:[%s554_s2] sm:$0xff] }
   0x6   :  { %379 = vmatprep.mubr.msk.f32.mxu0 %vm55_vm0, %v23_v3  ;;  %387 = vmatprep.mubr.msk.f32.mxu1 %vm55_vm0, %v23_v3 }
   0x7   :  { %397 = vset.pattern.permute.xlu0 %v447_v6  ;;  %398 = vset.pattern.permute.xlu1 %v447_v6 }
   0x8   :  { %12 = vsyncpa [#allocation4], 0  ;;  %380 = vmatmul.mubr.msk.f32.vlgmr.msra.gmra.mrb[0].mxu0 %vm55_vm0, %v24_v4  ;;  %388 = vmatmul.mubr.msk.f32.vlgmr.msra.gmra.mrb[0].mxu1 %vm55_vm0, %v24_v4  ;;  %v26_v9 = vld [vmem:[%s553_s1 + $0x18] sm:$0xff]  ;;  %v28_v11 = vld [vmem:[%s554_s2 + $0x8] sm:$0xff]  ;;  %vm180_vm1 = vcmask 64512   ;;  %v195_v4 = vlaneseq  ;;  %vm211_vm2 = vcmask 57344  }
   0x9   :  { %382 = vmatprep.mubr.msk.f32.mxu0 %vm55_vm0, %v25_v5  ;;  %390 = vmatprep.mubr.msk.f32.mxu1 %vm55_vm0, %v25_v5  ;;  %v30_v10 = vld [vmem:[%s554_s2 + $0x18] sm:$0xff]  ;;  %v31_v12 = vld [vmem:[%s555_s3] sm:$0xff]  ;;  %v32_v13 = vld [vmem:[%s555_s3 + $0x8] sm:$0xff]  ;;  %s448_s2 = smov [#allocation3]  }
   0xa   :  { %47 = vperm.xlu0 %397, %v29_v7   ;;  %37 = vperm.xlu1 %398, %v27_v8   ;;  %v33_v14 = vld [vmem:[#allocation2] sm:$0x1]  ;;  %s345_s3 = sshll.u32 %s448_s2, 4  ;;  %s346_s3 = int_to_ptr.vmem [resolvable:$true] %s345_s3 }
   0xb   :  { %s423_s16 = scalar_lea.vmem %s346_s3, 32  ;;  %p428_p1 = scmp.lt.s32.totalorder %s346_s3, %s346_s3 }
   0xc   :  { %383 = vmatmul.mubr.msk.f32.gmra.mrb[2].mxu0 %vm55_vm0, %v26_v9  ;;  %391 = vmatmul.mubr.msk.f32.gmra.mrb[2].mxu1 %vm55_vm0, %v26_v9  ;;  %p424_p0 = scmp.ne.s32.totalorder %s346_s3, %s423_s16  ;;  %p429_p2 = scmp.lt.s32.totalorder %s423_s16, %s423_s16 }
   0xe   :  { %52 = vperm.xlu0 %397, %v30_v10   ;;  %42 = vperm.xlu1 %398, %v28_v11   ;;  %v196_v10 = vshrl.u32 %v195_v4, 7  ;;  %p430_p3 = por %p429_p2, %p428_p1 }
  0x10   :  { %p431_p4 = pnand %p430_p3, %p424_p0 }
  0x12   :  { %170 = vperm.xlu0 %397, %v31_v12   ;;  %175 = vperm.xlu1 %398, %v32_v13  }
  0x16   :  { %192 = vperm.xlu0 %397, %v33_v14  }
  0x89   :  { %v48_v15 = vpop.permute.xlu0 %47  ;;  %v38_v16 = vpop.permute.xlu1 %37 }
  0x8d   :  { %v53_v21 = vpop.permute.xlu0 %52  ;;  %v43_v28 = vpop.permute.xlu1 %42 }
  0x91   :  { %v176_v55 = vpop.permute.xlu1 %175  ;;  %v171_v60 = vpop.permute.xlu0 %170 }
  0xdb   :  { %v381_v17 = vpop.f32.mrb[0].mxu0  ;;  %v389_v18 = vpop.f32.mrb[0].mxu1 }
  0xdc   :  { %v137_v19 = vpop.f32.mrb[1].mxu0  ;;  %v284_v20 = vpop.f32.mrb[1].mxu1  ;;  %v143_v35 = vadd.f32 %v381_v17, %v43_v28  ;;  %v290_v36 = vadd.f32 %v389_v18, %v43_v28 }
  0xdd   :  { %v138_v37 = vadd.f32 %v137_v19, %v38_v16  ;;  %v285_v38 = vadd.f32 %v284_v20, %v38_v16  ;;  %v193_v17 = vpop.permute.xlu0 %192 }
  0xdf   :  { %v384_v22 = vpop.f32.mrb[2].mxu0  ;;  %v392_v23 = vpop.f32.mrb[2].mxu1 }
  0xe0   :  { %v153_v24 = vadd.f32 %v384_v22, %v53_v21  ;;  %v300_v25 = vadd.f32 %v392_v23, %v53_v21  ;;  %v147_v26 = vpop.f32.mrb[3].mxu0  ;;  %v294_v27 = vpop.f32.mrb[3].mxu1 }
  0xe1   :  { %v148_v29 = vadd.f32 %v147_v26, %v48_v15  ;;  %v295_v30 = vadd.f32 %v294_v27, %v48_v15  ;;  %v197_v15 = vsub.s32 0, %v196_v10 }
  0xe2   :  { %v159_v31 = vmul.f32 0.5, %v153_v24  ;;  %v306_v32 = vmul.f32 0.5, %v300_v25 }
  0xe3   :  { %v158_v33 = vmul.f32 0.5, %v148_v29  ;;  %v305_v34 = vmul.f32 0.5, %v295_v30  ;;  %v198_v21 = vrot.slane %v193_v17, %v197_v15 }
  0xe4   :  { %399 = vtanh.f32 %v159_v31 }
  0xe5   :  { %401 = vtanh.f32 %v306_v32 }
  0xe6   :  { %403 = vtanh.f32 %v158_v33 }
  0xe7   :  { %405 = vtanh.f32 %v305_v34 }
  0xe8   :  { %407 = vtanh.f32 %v143_v35 }
  0xe9   :  { %409 = vtanh.f32 %v290_v36 }
  0xea   :  { %411 = vtanh.f32 %v138_v37 }
  0xeb   :  { %413 = vtanh.f32 %v285_v38 }
  0xee   :  { %v400_v39 = vpop.eup %399 }
  0xef   :  { %v402_v40 = vpop.eup %401  ;;  %v163_v41 = vadd.f32 1.0, %v400_v39 }
  0xf0   :  { %v404_v42 = vpop.eup %403  ;;  %v310_v43 = vadd.f32 1.0, %v402_v40 }
  0xf1   :  { %v406_v44 = vpop.eup %405  ;;  %v165_v45 = vmul.f32 0.5, %v163_v41  ;;  %v162_v46 = vadd.f32 1.0, %v404_v42 }
  0xf2   :  { %v408_v47 = vpop.eup %407  ;;  %v312_v48 = vmul.f32 0.5, %v310_v43  ;;  %v309_v49 = vadd.f32 1.0, %v406_v44 }
  0xf3   :  { %v410_v50 = vpop.eup %409  ;;  %v164_v51 = vmul.f32 0.5, %v162_v46  ;;  %v167_v52 = vmul.f32 %v408_v47, %v165_v45 }
  0xf4   :  { %v412_v53 = vpop.eup %411  ;;  %v311_v54 = vmul.f32 0.5, %v309_v49  ;;  %v314_v56 = vmul.f32 %v410_v50, %v312_v48 }
  0xf5   :  { %v414_v57 = vpop.eup %413  ;;  %v166_v58 = vmul.f32 %v412_v53, %v164_v51  ;;  %v179_v59 = vmul.f32 %v176_v55, %v167_v52 }
  0xf6   :  { %v313_v61 = vmul.f32 %v414_v57, %v311_v54  ;;  %v316_v62 = vmul.f32 %v314_v56, %v176_v55 }
  0xf7   :  { %v178_v63 = vmul.f32 %v171_v60, %v166_v58  ;;  %v182_v0 = vsel %vm180_vm1, %v179_v59, 0.0 }
  0xf8   :  { %v315_v1 = vmul.f32 %v313_v61, %v171_v60  ;;  %v318_v2 = vsel %vm180_vm1, %v316_v62, 0.0 }
  0xf9   :  { %v181_v3 = vsel %vm180_vm1, %v178_v63, 0.0 }
  0xfa   :  { %v183_v5 = vadd.f32 %v182_v0, %v181_v3  ;;  %v317_v6 = vsel %vm180_vm1, %v315_v1, 0.0 }
  0xfb   :  { %v319_v7 = vadd.f32 %v318_v2, %v317_v6 }
  0xfc   :  { %v184_v8 = vrot.slane %v183_v5, 4 }
  0xfd   :  { %v320_v9 = vrot.slane %v319_v7, 4 }
  0xfe   :  { %v185_v11 = vadd.f32 %v184_v8, %v183_v5 }
  0xff   :  { %v321_v12 = vadd.f32 %v320_v9, %v319_v7 }
 0x100   :  { %v186_v13 = vrot.slane %v185_v11, 2 }
 0x101   :  { %v322_v14 = vrot.slane %v321_v12, 2 }
 0x102   :  { %v187_v16 = vadd.f32 %v186_v13, %v185_v11 }
 0x103   :  { %v323_v18 = vadd.f32 %v322_v14, %v321_v12 }
 0x104   :  { %v188_v19 = vrot.slane %v187_v16, 1 }
 0x105   :  { %v324_v20 = vrot.slane %v323_v18, 1 }
 0x106   :  { %v189_v22 = vadd.f32 %v188_v19, %v187_v16 }
 0x107   :  { %v325_v23 = vadd.f32 %v324_v20, %v323_v18 }
 0x108   :  { %v199_v24 = vadd.f32 %v198_v21, %v189_v22 }
 0x109   :  { %v326_v25 = vadd.f32 %v325_v23, %v198_v21 }
 0x10a   :  { %v200_v26 = vsel %vm180_vm1, %v199_v24, -inf }
 0x10b   :  { %v327_v27 = vsel %vm180_vm1, %v326_v25, -inf  ;;  %201 = vmax.xlane.f32.xlu1 %v200_v26 }
 0x10c   :  { %328 = vmax.xlane.f32.xlu0 %v327_v27 }
 0x198   :  { %v202_v28 = vpop.xlane.xlu1 %201 }
 0x199   :  { %v329_v29 = vpop.xlane.xlu0 %328  ;;  %v203_v30 = vsub.f32 %v199_v24, %v202_v28 }
 0x19a   :  { %v330_v31 = vsub.f32 %v326_v25, %v329_v29 }
 0x19b   :  { %v204_v32 = vmul.f32 1.442695, %v203_v30 }
 0x19c   :  { %v331_v33 = vmul.f32 1.442695, %v330_v31 }
 0x19d   :  { %415 = vpow2.f32 %v204_v32 }
 0x19e   :  { %417 = vpow2.f32 %v331_v33 }
 0x1a7   :  { %v416_v34 = vpop.eup %415 }
 0x1a8   :  { %v418_v35 = vpop.eup %417  ;;  %v206_v36 = vsel %vm180_vm1, %v416_v34, 0.0 }
 0x1a9   :  { %v333_v37 = vsel %vm180_vm1, %v418_v35, 0.0  ;;  %207 = vadd.xlane.f32.xlu0 %v206_v36 }
 0x1aa   :  { %334 = vadd.xlane.f32.xlu1 %v333_v37 }
 0x236   :  { %v208_v38 = vpop.xlane.xlu0 %207 }
 0x237   :  { %419 = vrcp.f32 %v208_v38  ;;  %v335_v39 = vpop.xlane.xlu1 %334 }
 0x238   :  { %421 = vrcp.f32 %v335_v39 }
 0x241   :  { %v420_v40 = vpop.eup %419 }
 0x242   :  { %v422_v41 = vpop.eup %421  ;;  %v210_v42 = vmul.f32 %v420_v40, %v416_v34 }
 0x243   :  { %v337_v43 = vmul.f32 %v422_v41, %v418_v35 }
 0x244   :  { %212 = vst.msk [vmem:[#allocation3] sm:$0x1] %vm211_vm2, %v210_v42 }
 0x245   :  { %339 = vst.msk [vmem:[#allocation3 + $0x1] sm:$0x1] %vm211_vm2, %v337_v43 }
 0x246   :  { %434 = shalt.err (!%p431_p4)
}
 0x247   :  { %s435_s19 = scalar_lea.hbm %s557_s5, 32 }
 0x248   :  { %p436_p5 = scmp.ne.s32.totalorder %s557_s5, %s435_s19  ;;  %p439_p6 = scmp.lt.u32.totalorder %s435_s19, %s557_s5 }
 0x24a   :  { %p441_p7 = pnand %p439_p6, %p436_p5 }
 0x24c   :  { %444 = shalt.err (!%p441_p7)
}
 0x24d   :  { %s449_s24 = smov 16   ;;  %s450_s25 = smov 1  }
 0x24e   :  { %351 = dma.vmem_to_hbm [thread:$0]  %s346_s3, 32, %s557_s5, [#allocation4], %s449_s24, %s449_s24, %s450_s25  }
 0x24f   :  { %445 = dma.done.wait [#allocation4], 32  }
 0x250   :  { %446 = vsyncadd [#allocation4], 4294967264 }
 0x251   :  { %355 = vsyncpa [#allocation4], 1 }

</bundles_post_ra>
